<compile_context>
chip_gen: v5e
topology: v5e:2x2
jax: 0.10.0
libtpu: 0.0.40
codegen_flags: <defaults>
</compile_context>

<pallas_src>
import jax
import jax.numpy as jnp
from jax.experimental import pallas as pl
from jax.experimental.pallas import tpu as pltpu

EPS = 1e-5
_BF16_TILE = 16            # bf16 sublane tile height: keep scratch stores tile-aligned
_DATA_OFF = _BF16_TILE     # first data row in each per-image slab (top halo row = _DATA_OFF-1)


def _slab_stride(h):
    """Per-image row stride in the padded bf16 scratch (bf16-tile aligned)."""
    h_ceil = ((h + _BF16_TILE - 1) // _BF16_TILE) * _BF16_TILE
    return _DATA_OFF + h_ceil + _BF16_TILE


def _make_block_kernel(n, h, w, c):
    """Fused conv3x3+BN+ReLU -> conv3x3+BN -> +residual -> ReLU for static (N, H, W, C)."""
    wc = w * c
    hp = _slab_stride(h)
    inv_m = 1.0 / float(n * h * w)

    def lane_group_allsum(t):
        # Per-channel sum over the W groups of the (w*C + c) lane layout, re-broadcast to
        # every lane, via cyclic stride-C roll-adds (XLU) -- replaces the spread matmul.
        if w & (w - 1) == 0:                       # power-of-two W: log2(W) doubling steps
            s = c
            while s < wc:
                t = t + pltpu.roll(t, shift=s, axis=1)
                s *= 2
            return t
        acc = t                                     # generic W: W-1 single-step rolls
        for k in range(1, w):
            acc = acc + pltpu.roll(t, shift=k * c, axis=1)
        return acc

    def kernel(x_ref, w1_ref, w2_ref, bn_ref, o_ref, pad_ref):
        # x_ref   : (N*H, W*C)    f32   input rows, lane-dense (lane = w*C + c)
        # w1/w2   : (3*W*C, W*C)  bf16  banded conv weights (9 taps + W zero-padding folded in)
        # bn_ref  : (4, W*C)      f32   [gamma1; beta1; gamma2; beta2], each tiled across W
        # o_ref   : (N*H, W*C)    f32   block output (lane dense, unmasked stores)
        # pad_ref : (N*hp, W*C)   bf16  scratch: H-padded activations (x, then h1)

        def patch_slab():
            # (N*H, 3*W*C) bf16: for each output row, its three dy input rows side by side.
            # TODO(synk): banded weights waste ~W/3 MACs (band density 3/W); switch to a
            # dense per-tap (rows, Cin)@(Cin, Cout) formulation once Cin >= 64.
            parts = []
            for ni in range(n):
                base = ni * hp + _DATA_OFF - 1
                rows = [pad_ref[base + dy: base + dy + h, :] for dy in range(3)]
                parts.append(jnp.concatenate(rows, axis=1))
            return parts[0] if n == 1 else jnp.concatenate(parts, axis=0)

        def bn_scale_shift(acc, gamma, beta):
            # Training-mode BN from batch statistics (one-pass sum / sum-of-squares).
            stats = jnp.concatenate(
                [jnp.sum(acc, axis=0, keepdims=True),
                 jnp.sum(acc * acc, axis=0, keepdims=True)], axis=0)      # (2, W*C)
            tot = lane_group_allsum(stats)                                # per-channel totals
            mean = tot[0:1, :] * inv_m
            var = tot[1:2, :] * inv_m - mean * mean
            scale = gamma * jax.lax.rsqrt(var + EPS)
            shift = beta - mean * scale
            return scale, shift

        # ---- stage x (bf16) into the aligned H-padded scratch; zero only the halo tiles ----
        ztop = jnp.zeros((_DATA_OFF, wc), jnp.bfloat16)
        zbot = jnp.zeros((hp - _DATA_OFF - h, wc), jnp.bfloat16)
        for ni in range(n):
            img = ni * hp
            base = img + _DATA_OFF
            pad_ref[img: base, :] = ztop                   # covers top halo row (aligned tile)
            pad_ref[base + h: img + hp, :] = zbot          # covers bottom halo row (aligned)
            pad_ref[base: base + h, :] = x_ref[ni * h: (ni + 1) * h, :].astype(jnp.bfloat16)

        # ---- layer 1: conv1 (bias cancels under batch-stat BN) + BN1 + ReLU ----
        acc1 = jnp.dot(patch_slab(), w1_ref[...], preferred_element_type=jnp.float32)
        scale1, shift1 = bn_scale_shift(acc1, bn_ref[0:1, :], bn_ref[1:2, :])
        h1 = jnp.maximum(acc1 * scale1 + shift1, 0.0).astype(jnp.bfloat16)
        for ni in range(n):
            base = ni * hp + _DATA_OFF
            pad_ref[base: base + h, :] = h1[ni * h: (ni + 1) * h, :]   # halo rows stay zero

        # ---- layer 2: conv2 + BN2 + residual + ReLU ----
        acc2 = jnp.dot(patch_slab(), w2_ref[...], preferred_element_type=jnp.float32)
        scale2, shift2 = bn_scale_shift(acc2, bn_ref[2:3, :], bn_ref[3:4, :])
        o_ref[...] = jnp.maximum(acc2 * scale2 + shift2 + x_ref[...], 0.0)

    return kernel


def _banded_conv_weights(wt, width):
    """PyTorch OIHW (Cout, Cin, 3, 3) -> (3*W*Cin, W*Cout) banded matrix.

    Row  dy*(W*Cin) + w_in*Cin + ci  maps to column  w_out*Cout + co  with value
    wt[co, ci, dy, dx] where w_in = w_out + dx - 1; out-of-range taps (W padding) are
    absent, so the kernel needs no W halo.
    """
    cout, cin = wt.shape[0], wt.shape[1]
    bands = []
    for dy in range(3):
        band = jnp.zeros((width * cin, width * cout), jnp.float32)
        for dx in range(3):
            blk = jnp.transpose(wt[:, :, dy, dx]).astype(jnp.float32)   # (Cin, Cout)
            shift = jnp.eye(width, width, k=1 - dx, dtype=jnp.float32)  # w_out = w_in + 1 - dx
            band = band + jnp.kron(shift, blk)
        bands.append(band)
    return jnp.concatenate(bands, axis=0)


def pack_block_params(params, width):
    """One-time (per weight update) packing, hoisted out of the per-forward jit path."""
    w1 = _banded_conv_weights(params["conv1_w"], width).astype(jnp.bfloat16)
    w2 = _banded_conv_weights(params["conv2_w"], width).astype(jnp.bfloat16)
    bn = jnp.stack([jnp.tile(params["bn1_g"], width),
                    jnp.tile(params["bn1_b"], width),
                    jnp.tile(params["bn2_g"], width),
                    jnp.tile(params["bn2_b"], width)]).astype(jnp.float32)
    # conv1_b / conv2_b intentionally not packed: per-channel bias added before training-mode
    # (batch-statistic) BN mean subtraction cancels exactly.
    return dict(w1=w1, w2=w2, bn=bn)


def basic_block_forward(x_nchw, packed):
    """BasicBlock.forward with stride=1, downsample=None. I/O layout: NCHW, f32."""
    # TODO(synk): BatchNorm running_mean/running_var momentum updates are a training-time
    # side effect and do not affect this forward output; not reproduced.
    # TODO(synk): for real ResNet sizes (N=32, H=W=56, C>=64) this single VMEM-resident call
    # must be tiled with a grid (parallel row/N axis for v7x's two TensorCores), a two-pass
    # BN reduction, per-tap dense weights, and an explicit vmem_limit_bytes budget.
    n, c, h, w = x_nchw.shape
    wc = w * c
    x_rows = jnp.transpose(x_nchw, (0, 2, 3, 1)).reshape(n * h, wc)   # lane-dense rows
    vmem = pl.BlockSpec(memory_space=pltpu.MemorySpace.VMEM)
    out2d = pl.pallas_call(
        _make_block_kernel(n, h, w, c),
        out_shape=jax.ShapeDtypeStruct((n * h, wc), jnp.float32),
        in_specs=[vmem] * 4,
        out_specs=vmem,
        scratch_shapes=[pltpu.VMEM((n * _slab_stride(h), wc), jnp.bfloat16)],
    )(x_rows, packed["w1"], packed["w2"], packed["bn"])
    out = out2d.reshape(n, h, w, c)            # free: (n*h, w*c) row-major == (n, h, w, c)
    return jnp.transpose(out, (0, 3, 1, 2))    # NHWC -> NCHW


def init_basic_block_params(key, inplanes, planes):
    """Deterministic synthetic params with the same shapes as BasicBlock.__init__."""
    ks = jax.random.split(key, 8)

    def conv_w(k, cin, cout):
        bound = 1.0 / jnp.sqrt(cin * 9.0)
        return jax.random.uniform(k, (cout, cin, 3, 3), jnp.float32, -bound, bound)

    def conv_b(k, cin, cout):
        bound = 1.0 / jnp.sqrt(cin * 9.0)
        return jax.random.uniform(k, (cout,), jnp.float32, -bound, bound)

    return dict(
        conv1_w=conv_w(ks[0], inplanes, planes),
        conv1_b=conv_b(ks[1], inplanes, planes),
        bn1_g=1.0 + 0.1 * jax.random.normal(ks[2], (planes,), jnp.float32),
        bn1_b=0.1 * jax.random.normal(ks[3], (planes,), jnp.float32),
        conv2_w=conv_w(ks[4], planes, planes),
        conv2_b=conv_b(ks[5], planes, planes),
        bn2_g=1.0 + 0.1 * jax.random.normal(ks[6], (planes,), jnp.float32),
        bn2_b=0.1 * jax.random.normal(ks[7], (planes,), jnp.float32),
    )


def _ref_forward(x, p):
    """Pure-JAX reference (NCHW, f32), mirrors the PyTorch forward in training mode."""
    def conv(x, w, b):
        y = jax.lax.conv_general_dilated(
            x, w, window_strides=(1, 1), padding=((1, 1), (1, 1)),
            dimension_numbers=("NCHW", "OIHW", "NCHW"),
            precision=jax.lax.Precision.HIGHEST)
        return y + b[None, :, None, None]

    def bn(x, g, be):
        mean = jnp.mean(x, axis=(0, 2, 3), keepdims=True)
        var = jnp.mean(jnp.square(x - mean), axis=(0, 2, 3), keepdims=True)
        return (x - mean) * jax.lax.rsqrt(var + EPS) * g[None, :, None, None] \
            + be[None, :, None, None]

    residual = x
    h = jax.nn.relu(bn(conv(x, p["conv1_w"], p["conv1_b"]), p["bn1_g"], p["bn1_b"]))
    return jax.nn.relu(
        bn(conv(h, p["conv2_w"], p["conv2_b"]), p["bn2_g"], p["bn2_b"]) + residual)


if __name__ == "__main__":
    key = jax.random.PRNGKey(0)
    kx, kp = jax.random.split(key)
    N, C, H, W = 2, 8, 16, 16                 # inplanes = planes = 8, stride = 1 (W*C = 128)
    x = jax.random.normal(kx, (N, C, H, W), jnp.float32)
    params = init_basic_block_params(kp, inplanes=C, planes=C)

    packed = pack_block_params(params, width=W)   # hoisted: built once, not per forward call
    fwd = jax.jit(basic_block_forward)
    out = jax.block_until_ready(fwd(x, packed))

    ref = _ref_forward(x, params)
    assert out.shape == (N, C, H, W), out.shape
    max_err = float(jnp.max(jnp.abs(out - ref)))
    assert jnp.allclose(out, ref, rtol=2e-2, atol=3e-2), max_err   # bf16-matmul accuracy contract
    print("KERNEL_OK")
</pallas_src>

<mosaic_0001>
module attributes {stable_mosaic.version = 11 : i64} {
  func.func @kernel(%arg0: memref<32x128xf32, #tpu.memory_space<vmem>>, %arg1: memref<384x128xbf16, #tpu.memory_space<vmem>>, %arg2: memref<384x128xbf16, #tpu.memory_space<vmem>>, %arg3: memref<4x128xf32, #tpu.memory_space<vmem>>, %arg4: memref<32x128xf32, #tpu.memory_space<vmem>>, %arg5: memref<96x128xbf16, #tpu.memory_space<vmem>>) attributes {dimension_semantics = [], scalar_prefetch = 0 : i64, scratch_operands = 1 : i64, tpu.core_type = #tpu.core_type<tc>} {
    %cst = arith.constant 0.000000e+00 : bf16
    %0 = vector.broadcast %cst : bf16 to vector<16x128xbf16>
    %cst_0 = arith.constant 0.000000e+00 : bf16
    %1 = vector.broadcast %cst_0 : bf16 to vector<16x128xbf16>
    %c0 = arith.constant 0 : index
    %c0_1 = arith.constant 0 : index
    %2 = vector.load %arg5[%c0, %c0_1] : memref<96x128xbf16, #tpu.memory_space<vmem>>, vector<16x128xbf16>
    tpu.vector_store %arg5[%c0, %c0_1], %0 {strides = array<i32>} : memref<96x128xbf16, #tpu.memory_space<vmem>>, vector<16x128xbf16>,
    %c32 = arith.constant 32 : index
    %c0_2 = arith.constant 0 : index
    %3 = vector.load %arg5[%c32, %c0_2] : memref<96x128xbf16, #tpu.memory_space<vmem>>, vector<16x128xbf16>
    tpu.vector_store %arg5[%c32, %c0_2], %1 {strides = array<i32>} : memref<96x128xbf16, #tpu.memory_space<vmem>>, vector<16x128xbf16>,
    %c0_3 = arith.constant 0 : index
    %c0_4 = arith.constant 0 : index
    %4 = vector.load %arg0[%c0_3, %c0_4] : memref<32x128xf32, #tpu.memory_space<vmem>>, vector<16x128xf32>
    %5 = arith.truncf %4 : vector<16x128xf32> to vector<16x128xbf16>
    %c16 = arith.constant 16 : index
    %c0_5 = arith.constant 0 : index
    %6 = vector.load %arg5[%c16, %c0_5] : memref<96x128xbf16, #tpu.memory_space<vmem>>, vector<16x128xbf16>
    tpu.vector_store %arg5[%c16, %c0_5], %5 {strides = array<i32>} : memref<96x128xbf16, #tpu.memory_space<vmem>>, vector<16x128xbf16>,
    %c48 = arith.constant 48 : index
    %c0_6 = arith.constant 0 : index
    %7 = vector.load %arg5[%c48, %c0_6] : memref<96x128xbf16, #tpu.memory_space<vmem>>, vector<16x128xbf16>
    tpu.vector_store %arg5[%c48, %c0_6], %0 {strides = array<i32>} : memref<96x128xbf16, #tpu.memory_space<vmem>>, vector<16x128xbf16>,
    %c80 = arith.constant 80 : index
    %c0_7 = arith.constant 0 : index
    %8 = vector.load %arg5[%c80, %c0_7] : memref<96x128xbf16, #tpu.memory_space<vmem>>, vector<16x128xbf16>
    tpu.vector_store %arg5[%c80, %c0_7], %1 {strides = array<i32>} : memref<96x128xbf16, #tpu.memory_space<vmem>>, vector<16x128xbf16>,
    %c16_8 = arith.constant 16 : index
    %c0_9 = arith.constant 0 : index
    %9 = vector.load %arg0[%c16_8, %c0_9] : memref<32x128xf32, #tpu.memory_space<vmem>>, vector<16x128xf32>
    %10 = arith.truncf %9 : vector<16x128xf32> to vector<16x128xbf16>
    %c64 = arith.constant 64 : index
    %c0_10 = arith.constant 0 : index
    %11 = vector.load %arg5[%c64, %c0_10] : memref<96x128xbf16, #tpu.memory_space<vmem>>, vector<16x128xbf16>
    tpu.vector_store %arg5[%c64, %c0_10], %10 {strides = array<i32>} : memref<96x128xbf16, #tpu.memory_space<vmem>>, vector<16x128xbf16>,
    %c15 = arith.constant 15 : index
    %c0_11 = arith.constant 0 : index
    %12 = vector.load %arg5[%c15, %c0_11] : memref<96x128xbf16, #tpu.memory_space<vmem>>, vector<16x128xbf16>
    %c16_12 = arith.constant 16 : index
    %c0_13 = arith.constant 0 : index
    %13 = vector.load %arg5[%c16_12, %c0_13] : memref<96x128xbf16, #tpu.memory_space<vmem>>, vector<16x128xbf16>
    %c17 = arith.constant 17 : index
    %c0_14 = arith.constant 0 : index
    %14 = vector.load %arg5[%c17, %c0_14] : memref<96x128xbf16, #tpu.memory_space<vmem>>, vector<16x128xbf16>
    %15 = tpu.concatenate %12, %13, %14 in 1 : vector<16x128xbf16>, vector<16x128xbf16>, vector<16x128xbf16> -> vector<16x384xbf16>
    %c63 = arith.constant 63 : index
    %c0_15 = arith.constant 0 : index
    %16 = vector.load %arg5[%c63, %c0_15] : memref<96x128xbf16, #tpu.memory_space<vmem>>, vector<16x128xbf16>
    %c64_16 = arith.constant 64 : index
    %c0_17 = arith.constant 0 : index
    %17 = vector.load %arg5[%c64_16, %c0_17] : memref<96x128xbf16, #tpu.memory_space<vmem>>, vector<16x128xbf16>
    %c65 = arith.constant 65 : index
    %c0_18 = arith.constant 0 : index
    %18 = vector.load %arg5[%c65, %c0_18] : memref<96x128xbf16, #tpu.memory_space<vmem>>, vector<16x128xbf16>
    %19 = tpu.concatenate %16, %17, %18 in 1 : vector<16x128xbf16>, vector<16x128xbf16>, vector<16x128xbf16> -> vector<16x384xbf16>
    %20 = tpu.concatenate %15, %19 in 0 : vector<16x384xbf16>, vector<16x384xbf16> -> vector<32x384xbf16>
    %c0_19 = arith.constant 0 : index
    %c0_20 = arith.constant 0 : index
    %21 = vector.load %arg1[%c0_19, %c0_20] : memref<384x128xbf16, #tpu.memory_space<vmem>>, vector<384x128xbf16>
    %cst_21 = arith.constant dense<0.000000e+00> : vector<32x128xf32>
    %22 = tpu.matmul %20, %21, %cst_21 {dimension_numbers = #tpu.dot_dimension_numbers<[1], [0], [0], [1], [0, 0, 1, 1], [], []>} : vector<32x384xbf16>, vector<384x128xbf16>, vector<32x128xf32> -> vector<32x128xf32>
    %c0_22 = arith.constant 0 : index
    %c0_23 = arith.constant 0 : index
    %23 = vector.load %arg3[%c0_22, %c0_23] : memref<4x128xf32, #tpu.memory_space<vmem>>, vector<1x128xf32>
    %c1 = arith.constant 1 : index
    %c0_24 = arith.constant 0 : index
    %24 = vector.load %arg3[%c1, %c0_24] : memref<4x128xf32, #tpu.memory_space<vmem>>, vector<1x128xf32>
    %cst_25 = arith.constant dense<0.000000e+00> : vector<128xf32>
    %25 = vector.multi_reduction <add>, %22, %cst_25 [0] : vector<32x128xf32> to vector<128xf32>
    %26 = vector.shape_cast %25 : vector<128xf32> to vector<1x128xf32>
    %27 = arith.mulf %22, %22 : vector<32x128xf32>
    %cst_26 = arith.constant dense<0.000000e+00> : vector<128xf32>
    %28 = vector.multi_reduction <add>, %27, %cst_26 [0] : vector<32x128xf32> to vector<128xf32>
    %29 = vector.shape_cast %28 : vector<128xf32> to vector<1x128xf32>
    %30 = tpu.concatenate %26, %29 in 0 : vector<1x128xf32>, vector<1x128xf32> -> vector<2x128xf32>
    %c8_i32 = arith.constant 8 : i32
    %31 = tpu.dynamic_rotate %30 by %c8_i32 dim 1 : vector<2x128xf32>, i32 -> vector<2x128xf32>
    %32 = arith.addf %30, %31 : vector<2x128xf32>
    %c16_i32 = arith.constant 16 : i32
    %33 = tpu.dynamic_rotate %32 by %c16_i32 dim 1 : vector<2x128xf32>, i32 -> vector<2x128xf32>
    %34 = arith.addf %32, %33 : vector<2x128xf32>
    %c32_i32 = arith.constant 32 : i32
    %35 = tpu.dynamic_rotate %34 by %c32_i32 dim 1 : vector<2x128xf32>, i32 -> vector<2x128xf32>
    %36 = arith.addf %34, %35 : vector<2x128xf32>
    %c64_i32 = arith.constant 64 : i32
    %37 = tpu.dynamic_rotate %36 by %c64_i32 dim 1 : vector<2x128xf32>, i32 -> vector<2x128xf32>
    %38 = arith.addf %36, %37 : vector<2x128xf32>
    %39 = vector.extract_strided_slice %38 {offsets = [0, 0], sizes = [1, 128], strides = [1, 1]} : vector<2x128xf32> to vector<1x128xf32>
    %cst_27 = arith.constant 0.001953125 : f32
    %40 = vector.broadcast %cst_27 : f32 to vector<1x128xf32>
    %41 = arith.mulf %39, %40 : vector<1x128xf32>
    %42 = vector.extract_strided_slice %38 {offsets = [1, 0], sizes = [1, 128], strides = [1, 1]} : vector<2x128xf32> to vector<1x128xf32>
    %cst_28 = arith.constant 0.001953125 : f32
    %43 = vector.broadcast %cst_28 : f32 to vector<1x128xf32>
    %44 = arith.mulf %42, %43 : vector<1x128xf32>
    %45 = arith.mulf %41, %41 : vector<1x128xf32>
    %46 = arith.subf %44, %45 : vector<1x128xf32>
    %cst_29 = arith.constant 9.99999974E-6 : f32
    %47 = vector.broadcast %cst_29 : f32 to vector<1x128xf32>
    %48 = arith.addf %46, %47 : vector<1x128xf32>
    %49 = math.rsqrt %48 : vector<1x128xf32>
    %50 = arith.mulf %23, %49 : vector<1x128xf32>
    %51 = arith.mulf %41, %50 : vector<1x128xf32>
    %52 = arith.subf %24, %51 : vector<1x128xf32>
    %53 = vector.broadcast %50 : vector<1x128xf32> to vector<32x128xf32>
    %54 = arith.mulf %22, %53 : vector<32x128xf32>
    %55 = vector.broadcast %52 : vector<1x128xf32> to vector<32x128xf32>
    %56 = arith.addf %54, %55 : vector<32x128xf32>
    %cst_30 = arith.constant 0.000000e+00 : f32
    %57 = vector.broadcast %cst_30 : f32 to vector<32x128xf32>
    %58 = arith.maximumf %56, %57 : vector<32x128xf32>
    %59 = arith.truncf %58 : vector<32x128xf32> to vector<32x128xbf16>
    %60 = vector.extract_strided_slice %59 {offsets = [0, 0], sizes = [16, 128], strides = [1, 1]} : vector<32x128xbf16> to vector<16x128xbf16>
    %c16_31 = arith.constant 16 : index
    %c0_32 = arith.constant 0 : index
    %61 = vector.load %arg5[%c16_31, %c0_32] : memref<96x128xbf16, #tpu.memory_space<vmem>>, vector<16x128xbf16>
    tpu.vector_store %arg5[%c16_31, %c0_32], %60 {strides = array<i32>} : memref<96x128xbf16, #tpu.memory_space<vmem>>, vector<16x128xbf16>,
    %62 = vector.extract_strided_slice %59 {offsets = [16, 0], sizes = [16, 128], strides = [1, 1]} : vector<32x128xbf16> to vector<16x128xbf16>
    %c64_33 = arith.constant 64 : index
    %c0_34 = arith.constant 0 : index
    %63 = vector.load %arg5[%c64_33, %c0_34] : memref<96x128xbf16, #tpu.memory_space<vmem>>, vector<16x128xbf16>
    tpu.vector_store %arg5[%c64_33, %c0_34], %62 {strides = array<i32>} : memref<96x128xbf16, #tpu.memory_space<vmem>>, vector<16x128xbf16>,
    %c15_35 = arith.constant 15 : index
    %c0_36 = arith.constant 0 : index
    %64 = vector.load %arg5[%c15_35, %c0_36] : memref<96x128xbf16, #tpu.memory_space<vmem>>, vector<16x128xbf16>
    %c16_37 = arith.constant 16 : index
    %c0_38 = arith.constant 0 : index
    %65 = vector.load %arg5[%c16_37, %c0_38] : memref<96x128xbf16, #tpu.memory_space<vmem>>, vector<16x128xbf16>
    %c17_39 = arith.constant 17 : index
    %c0_40 = arith.constant 0 : index
    %66 = vector.load %arg5[%c17_39, %c0_40] : memref<96x128xbf16, #tpu.memory_space<vmem>>, vector<16x128xbf16>
    %67 = tpu.concatenate %64, %65, %66 in 1 : vector<16x128xbf16>, vector<16x128xbf16>, vector<16x128xbf16> -> vector<16x384xbf16>
    %c63_41 = arith.constant 63 : index
    %c0_42 = arith.constant 0 : index
    %68 = vector.load %arg5[%c63_41, %c0_42] : memref<96x128xbf16, #tpu.memory_space<vmem>>, vector<16x128xbf16>
    %c64_43 = arith.constant 64 : index
    %c0_44 = arith.constant 0 : index
    %69 = vector.load %arg5[%c64_43, %c0_44] : memref<96x128xbf16, #tpu.memory_space<vmem>>, vector<16x128xbf16>
    %c65_45 = arith.constant 65 : index
    %c0_46 = arith.constant 0 : index
    %70 = vector.load %arg5[%c65_45, %c0_46] : memref<96x128xbf16, #tpu.memory_space<vmem>>, vector<16x128xbf16>
    %71 = tpu.concatenate %68, %69, %70 in 1 : vector<16x128xbf16>, vector<16x128xbf16>, vector<16x128xbf16> -> vector<16x384xbf16>
    %72 = tpu.concatenate %67, %71 in 0 : vector<16x384xbf16>, vector<16x384xbf16> -> vector<32x384xbf16>
    %c0_47 = arith.constant 0 : index
    %c0_48 = arith.constant 0 : index
    %73 = vector.load %arg2[%c0_47, %c0_48] : memref<384x128xbf16, #tpu.memory_space<vmem>>, vector<384x128xbf16>
    %cst_49 = arith.constant dense<0.000000e+00> : vector<32x128xf32>
    %74 = tpu.matmul %72, %73, %cst_49 {dimension_numbers = #tpu.dot_dimension_numbers<[1], [0], [0], [1], [0, 0, 1, 1], [], []>} : vector<32x384xbf16>, vector<384x128xbf16>, vector<32x128xf32> -> vector<32x128xf32>
    %c2 = arith.constant 2 : index
    %c0_50 = arith.constant 0 : index
    %75 = vector.load %arg3[%c2, %c0_50] : memref<4x128xf32, #tpu.memory_space<vmem>>, vector<1x128xf32>
    %c3 = arith.constant 3 : index
    %c0_51 = arith.constant 0 : index
    %76 = vector.load %arg3[%c3, %c0_51] : memref<4x128xf32, #tpu.memory_space<vmem>>, vector<1x128xf32>
    %cst_52 = arith.constant dense<0.000000e+00> : vector<128xf32>
    %77 = vector.multi_reduction <add>, %74, %cst_52 [0] : vector<32x128xf32> to vector<128xf32>
    %78 = vector.shape_cast %77 : vector<128xf32> to vector<1x128xf32>
    %79 = arith.mulf %74, %74 : vector<32x128xf32>
    %cst_53 = arith.constant dense<0.000000e+00> : vector<128xf32>
    %80 = vector.multi_reduction <add>, %79, %cst_53 [0] : vector<32x128xf32> to vector<128xf32>
    %81 = vector.shape_cast %80 : vector<128xf32> to vector<1x128xf32>
    %82 = tpu.concatenate %78, %81 in 0 : vector<1x128xf32>, vector<1x128xf32> -> vector<2x128xf32>
    %c8_i32_54 = arith.constant 8 : i32
    %83 = tpu.dynamic_rotate %82 by %c8_i32_54 dim 1 : vector<2x128xf32>, i32 -> vector<2x128xf32>
    %84 = arith.addf %82, %83 : vector<2x128xf32>
    %c16_i32_55 = arith.constant 16 : i32
    %85 = tpu.dynamic_rotate %84 by %c16_i32_55 dim 1 : vector<2x128xf32>, i32 -> vector<2x128xf32>
    %86 = arith.addf %84, %85 : vector<2x128xf32>
    %c32_i32_56 = arith.constant 32 : i32
    %87 = tpu.dynamic_rotate %86 by %c32_i32_56 dim 1 : vector<2x128xf32>, i32 -> vector<2x128xf32>
    %88 = arith.addf %86, %87 : vector<2x128xf32>
    %c64_i32_57 = arith.constant 64 : i32
    %89 = tpu.dynamic_rotate %88 by %c64_i32_57 dim 1 : vector<2x128xf32>, i32 -> vector<2x128xf32>
    %90 = arith.addf %88, %89 : vector<2x128xf32>
    %91 = vector.extract_strided_slice %90 {offsets = [0, 0], sizes = [1, 128], strides = [1, 1]} : vector<2x128xf32> to vector<1x128xf32>
    %cst_58 = arith.constant 0.001953125 : f32
    %92 = vector.broadcast %cst_58 : f32 to vector<1x128xf32>
    %93 = arith.mulf %91, %92 : vector<1x128xf32>
    %94 = vector.extract_strided_slice %90 {offsets = [1, 0], sizes = [1, 128], strides = [1, 1]} : vector<2x128xf32> to vector<1x128xf32>
    %cst_59 = arith.constant 0.001953125 : f32
    %95 = vector.broadcast %cst_59 : f32 to vector<1x128xf32>
    %96 = arith.mulf %94, %95 : vector<1x128xf32>
    %97 = arith.mulf %93, %93 : vector<1x128xf32>
    %98 = arith.subf %96, %97 : vector<1x128xf32>
    %cst_60 = arith.constant 9.99999974E-6 : f32
    %99 = vector.broadcast %cst_60 : f32 to vector<1x128xf32>
    %100 = arith.addf %98, %99 : vector<1x128xf32>
    %101 = math.rsqrt %100 : vector<1x128xf32>
    %102 = arith.mulf %75, %101 : vector<1x128xf32>
    %103 = arith.mulf %93, %102 : vector<1x128xf32>
    %104 = arith.subf %76, %103 : vector<1x128xf32>
    %105 = vector.broadcast %102 : vector<1x128xf32> to vector<32x128xf32>
    %106 = arith.mulf %74, %105 : vector<32x128xf32>
    %107 = vector.broadcast %104 : vector<1x128xf32> to vector<32x128xf32>
    %108 = arith.addf %106, %107 : vector<32x128xf32>
    %c0_61 = arith.constant 0 : index
    %c0_62 = arith.constant 0 : index
    %109 = vector.load %arg0[%c0_61, %c0_62] : memref<32x128xf32, #tpu.memory_space<vmem>>, vector<32x128xf32>
    %110 = arith.addf %108, %109 : vector<32x128xf32>
    %cst_63 = arith.constant 0.000000e+00 : f32
    %111 = vector.broadcast %cst_63 : f32 to vector<32x128xf32>
    %112 = arith.maximumf %110, %111 : vector<32x128xf32>
    %c0_64 = arith.constant 0 : index
    %c0_65 = arith.constant 0 : index
    %113 = vector.load %arg4[%c0_64, %c0_65] : memref<32x128xf32, #tpu.memory_space<vmem>>, vector<32x128xf32>
    tpu.vector_store %arg4[%c0_64, %c0_65], %112 {strides = array<i32>} : memref<32x128xf32, #tpu.memory_space<vmem>>, vector<32x128xf32>,
    return
  }
}

</mosaic_0001>

<bundles_post_ra>
// kernel: basic_block_forward.1
= control target key start
LH: loop header
LB: loop body
LE: loop exit
PB: predicated region body
PF: predicated region fallthrough
CT: control target
= control target key end

     0   :  { %v1332_v3 = vmov 0   ;;  %vm62_vm0 = vcmask 1042432   ;;  %vm93_vm1 = vsmask.f32 4352  ;;  %vm459_vm2 = vcmask 1040384   ;;  %s1334_s18 = smov 16   ;;  %s1674_s1 = inlined_call_operand.vmem [shape: bf16[384,128], index: 1, kind: input, shape index: {}]   ;;  %s1675_s0 = inlined_call_operand.vmem [shape: f32[32,128], index: 0, kind: input, shape index: {}]   ;;  %s1676_s2 = inlined_call_operand.vmem [shape: bf16[384,128], index: 2, kind: input, shape index: {}]   ;;  %s1677_s3 = inlined_call_operand.vmem [shape: f32[4,128], index: 3, kind: input, shape index: {}]   ;;  %s1678_s4 = inlined_call_operand.vmem [shape: f32[32,128], index: 4, kind: output, shape index: {}]  }
   0x1   :  { %v1202_v0 = vld [vmem:[%s1674_s1 + $0x38] sm:$0xff]  ;;  %19 = vst [vmem:[#allocation2 + $0x4] sm:$0xf] %v1332_v3  ;;  %v1201_v4 = vld [vmem:[%s1674_s1 + $0x30] sm:$0xff]  ;;  %v1200_v7 = vld [vmem:[%s1674_s1 + $0x28] sm:$0xff]  ;;  %s1335_s19 = smov 32  }
   0x2   :  { %v1210_v1 = vld [vmem:[%s1674_s1 + $0x78] sm:$0xff]  ;;  %378 = vmatpush.bf16.msra.mxu0 %v1202_v0  ;;  %v1209_v5 = vld [vmem:[%s1674_s1 + $0x70] sm:$0xff]  ;;  %20 = vst [vmem:[#allocation2 + $0x10] sm:$0xf] %v1332_v3  ;;  %v1208_v8 = vld [vmem:[%s1674_s1 + $0x68] sm:$0xff]  ;;  %s1336_s20 = smov 64  }
   0x3   :  { %v1218_v2 = vld [vmem:[%s1674_s1 + $0xb8] sm:$0xff]  ;;  %397 = vmatpush.bf16.msra.mxu1 %v1210_v1  ;;  %v1217_v6 = vld [vmem:[%s1674_s1 + $0xb0] sm:$0xff]  ;;  %29 = vst [vmem:[#allocation2 + $0x1c] sm:$0xf] %v1332_v3  ;;  %v1216_v9 = vld [vmem:[%s1674_s1 + $0xa8] sm:$0xff] }
   0x4   :  { %416 = vmatpush.bf16.msra.mxu2 %v1218_v2  ;;  %30 = vst [vmem:[#allocation2 + $0x28] sm:$0xf] %v1332_v3  ;;  %v1392_v10 = vld [vmem:[%s1675_s0] sm:$0xff]  ;;  %v1397_v11 = vld [vmem:[%s1675_s0 + $0x8] sm:$0xff]  ;;  %v1404_v13 = vld [vmem:[%s1675_s0 + $0x10] sm:$0xff] }
   0x5   :  { %v1246_v12 = vpack.c.bf16 %v1397_v11, %v1392_v10  ;;  %v1409_v14 = vld [vmem:[%s1675_s0 + $0x18] sm:$0xff]  ;;  %v1199_v15 = vld [vmem:[%s1674_s1 + $0x20] sm:$0xff]  ;;  %v1197_v35 = vld [vmem:[%s1674_s1 + $0x10] sm:$0xff] }
   0x6   :  { %379 = vmatpush.bf16.msra.mxu0 %v1201_v4  ;;  %v1207_v16 = vld [vmem:[%s1674_s1 + $0x60] sm:$0xff]  ;;  %v1419_v17 = vpack.c.bf16 %v1409_v14, %v1404_v13  ;;  %v1198_v27 = vld [vmem:[%s1674_s1 + $0x18] sm:$0xff]  ;;  %v1205_v36 = vld [vmem:[%s1674_s1 + $0x50] sm:$0xff] }
   0x7   :  { %398 = vmatpush.bf16.msra.mxu1 %v1209_v5  ;;  %v1215_v18 = vld [vmem:[%s1674_s1 + $0xa0] sm:$0xff]  ;;  %1279 = vst [vmem:[#allocation2 + $0x8] sm:$0xff] %v1246_v12   ;;  %v1256_v19 = vunpack.c.h.b16 %v1246_v12  ;;  %v52_v20 = vshrl.u32 %v1246_v12, 16  ;;  %v55_v21 = vshll.u32 %v1246_v12, 16  ;;  %v63_v23 = vrot.slane %v1246_v12, 5  ;;  %v1206_v28 = vld [vmem:[%s1674_s1 + $0x58] sm:$0xff] }
   0x8   :  { %417 = vmatpush.bf16.msra.mxu2 %v1217_v6  ;;  %1280 = vst [vmem:[#allocation2 + $0x20] sm:$0xff] %v1419_v17   ;;  %v1214_v30 = vld [vmem:[%s1674_s1 + $0x98] sm:$0xff]  ;;  %v1289_v32 = vld [vmem:[#allocation2 + $0x4] sm:$0x8]  ;;  %v1213_v42 = vld [vmem:[%s1674_s1 + $0x90] sm:$0xff]  ;;  %v80_v0 = vshrl.u32 %v1419_v17, 16 }
   0x9   :  { %v41_v22 = vld [vmem:[#allocation2 + $0x10] sm:$0x1]  ;;  %v54_v24 = vrot.slane %v52_v20, 4  ;;  %v57_v25 = vrot.slane %v55_v21, 5  ;;  %v49_v29 = vpack.c.b16 %v1256_v19, %v1256_v19  ;;  %v121_v34 = vshrl.u32 %v63_v23, 16  ;;  %v1196_v52 = vld [vmem:[%s1674_s1 + $0x8] sm:$0xff] }
   0xa   :  { %380 = vmatpush.bf16.msra.mxu0 %v1200_v7  ;;  %v60_v26 = vunpack.c.l.b16 %v41_v22  ;;  %v124_v41 = vshll.u32 %v63_v23, 16  ;;  %v1204_v53 = vld [vmem:[%s1674_s1 + $0x48] sm:$0xff]  ;;  %v83_v3 = vshll.u32 %v1419_v17, 16  ;;  %v1195_v5 = vld [vmem:[%s1674_s1] sm:$0xff]  ;;  %v90_v20 = vrot.slane %v1419_v17, 5 }
   0xb   :  { %399 = vmatpush.bf16.msra.mxu1 %v1208_v8  ;;  %v58_v33 = vor.u32 %v57_v25, %v54_v24  ;;  %v103_v38 = vshrl.u32 %v49_v29, 16  ;;  %v106_v39 = vshll.u32 %v49_v29, 16  ;;  %v123_v46 = vrot.slane %v121_v34, 3  ;;  %v69_v47 = vld [vmem:[#allocation2 + $0x28] sm:$0x1]  ;;  %v1203_v6 = vld [vmem:[%s1674_s1 + $0x40] sm:$0xff] }
   0xc   :  { %418 = vmatpush.bf16.msra.mxu2 %v1216_v9  ;;  %v61_v31 = vpack.c.b16 %v60_v26, %v60_v26  ;;  %v126_v56 = vrot.slane %v124_v41, 4  ;;  %v1212_v58 = vld [vmem:[%s1674_s1 + $0x88] sm:$0xff]  ;;  %v88_v62 = vunpack.c.l.b16 %v69_v47  ;;  %v1260_v9 = vunpack.c.h.b16 %v1419_v17  ;;  %v1211_v12 = vld [vmem:[%s1674_s1 + $0x80] sm:$0xff]  ;;  %s1333_s1 = smov 8  }
   0xd   :  { %v112_v44 = vshrl.u32 %v58_v33, 16  ;;  %v115_v50 = vshll.u32 %v58_v33, 16  ;;  %v105_v54 = vrot.slane %v103_v38, 3  ;;  %v108_v55 = vrot.slane %v106_v39, 4 }
   0xe   :  { %381 = vmatpush.bf16.msra.mxu0 %v1199_v15  ;;  %v1319_v37 = vld [vmem:[#allocation2 + $0x4] sm:$0xf0]   ;;  %v64_v40 = vrot.slane %v61_v31, 5  ;;  %v89_v4 = vpack.c.b16 %v88_v62, %v88_v62  ;;  %v127_v15 = vor.u32 %v126_v56, %v123_v46  ;;  %v85_v24 = vrot.slane %v83_v3, 5 }
   0xf   :  { %400 = vmatpush.bf16.msra.mxu1 %v1207_v16  ;;  %v1290_v43 = vor.u32 %v1319_v37, %v1289_v32  ;;  %v114_v1 = vrot.slane %v112_v44, 3  ;;  %v117_v2 = vrot.slane %v115_v50, 4  ;;  %v109_v8 = vor.u32 %v108_v55, %v105_v54  ;;  %v1320_v19 = vld [vmem:[#allocation2 + $0x1c] sm:$0xf0]  }
  0x10   :  { %419 = vmatpush.bf16.msra.mxu2 %v1215_v18  ;;  %v65_v45 = vsel %vm62_vm0, %v63_v23, %v64_v40  ;;  %v1293_v18 = vld [vmem:[#allocation2 + $0x1c] sm:$0x8]  ;;  %v91_v21 = vrot.slane %v89_v4, 5  ;;  %v82_v23 = vrot.slane %v80_v0, 4  ;;  %v167_v34 = vshrl.u32 %v90_v20, 16 }
  0x11   :  { %v95_v48 = vshrl.u32 %v1290_v43, 16  ;;  %v98_v49 = vshll.u32 %v1290_v43, 16  ;;  %v129_v51 = vshrl.u32 %v65_v45, 16  ;;  %v132_v57 = vshll.u32 %v65_v45, 16 }
  0x12   :  { %382 = vmatpush.bf16.msra.mxu0 %v1198_v27  ;;  %v118_v22 = vor.u32 %v117_v2, %v114_v1  ;;  %v1294_v26 = vor.u32 %v1320_v19, %v1293_v18  ;;  %v77_v27 = vpack.c.b16 %v1260_v9, %v1260_v9  ;;  %v92_v29 = vsel %vm62_vm0, %v90_v20, %v91_v21 }
  0x13   :  { %401 = vmatpush.bf16.msra.mxu1 %v1206_v28  ;;  %v97_v59 = vrot.slane %v95_v48, 3  ;;  %v100_v60 = vrot.slane %v98_v49, 4  ;;  %v131_v61 = vrot.slane %v129_v51, 3  ;;  %v134_v63 = vrot.slane %v132_v57, 4 }
  0x14   :  { %420 = vmatpush.bf16.msra.mxu2 %v1214_v30  ;;  %v86_v30 = vor.u32 %v85_v24, %v82_v23  ;;  %v141_v17 = vshrl.u32 %v1294_v26, 16  ;;  %v144_v31 = vshll.u32 %v1294_v26, 16  ;;  %v149_v32 = vshrl.u32 %v77_v27, 16 }
  0x15   :  { %v101_v7 = vor.u32 %v100_v60, %v97_v59  ;;  %v135_v16 = vor.u32 %v134_v63, %v131_v61  ;;  %v152_v33 = vshll.u32 %v77_v27, 16  ;;  %v178_v37 = vshll.u32 %v92_v29, 16 }
  0x16   :  { %383 = vmatpush.bf16.msra.mxu0 %v1197_v35  ;;  %v170_v35 = vshll.u32 %v90_v20, 16  ;;  %v158_v38 = vshrl.u32 %v86_v30, 16  ;;  %v161_v39 = vshll.u32 %v86_v30, 16  ;;  %v143_v40 = vrot.slane %v141_v17, 3 }
  0x17   :  { %402 = vmatpush.bf16.msra.mxu1 %v1205_v36  ;;  %v110_v25 = vsel %vm93_vm1, %v101_v7, %v109_v8  ;;  %v136_v28 = vsel %vm93_vm1, %v127_v15, %v135_v16  ;;  %v175_v36 = vshrl.u32 %v92_v29, 16  ;;  %v146_v41 = vrot.slane %v144_v31, 4 }
  0x18   :  { %421 = vmatpush.bf16.msra.mxu2 %v1213_v42  ;;  %v151_v42 = vrot.slane %v149_v32, 3  ;;  %v154_v43 = vrot.slane %v152_v33, 4  ;;  %v169_v44 = vrot.slane %v167_v34, 3  ;;  %v172_v45 = vrot.slane %v170_v35, 4 }
  0x19   :  { %v177_v46 = vrot.slane %v175_v36, 3  ;;  %v180_v47 = vrot.slane %v178_v37, 4  ;;  %v160_v48 = vrot.slane %v158_v38, 3  ;;  %v163_v49 = vrot.slane %v161_v39, 4 }
  0x1a   :  { %384 = vmatpush.bf16.msra.mxu0 %v1196_v52  ;;  %v147_v50 = vor.u32 %v146_v41, %v143_v40  ;;  %v155_v51 = vor.u32 %v154_v43, %v151_v42  ;;  %v173_v52 = vor.u32 %v172_v45, %v169_v44 }
  0x1b   :  { %403 = vmatpush.bf16.msra.mxu1 %v1204_v53  ;;  %v181_v53 = vor.u32 %v180_v47, %v177_v46  ;;  %v164_v54 = vor.u32 %v163_v49, %v160_v48  ;;  %v1499_v46 = vld [vmem:[%s1676_s2 + $0xb8] sm:$0xff]  ;;  %v1508_v48 = vld [vmem:[%s1676_s2 + $0xb0] sm:$0xff] }
  0x1c   :  { %422 = vmatpush.bf16.msra.mxu2 %v1212_v58  ;;  %v156_v55 = vsel %vm93_vm1, %v147_v50, %v155_v51  ;;  %v1234_v47 = vld [vmem:[%s1676_s2 + $0x78] sm:$0xff]  ;;  %v1233_v49 = vld [vmem:[%s1676_s2 + $0x70] sm:$0xff] }
  0x1d   :  { %v182_v56 = vsel %vm93_vm1, %v173_v52, %v181_v53  ;;  %v1226_v51 = vld [vmem:[%s1676_s2 + $0x38] sm:$0xff]  ;;  %v1520_v53 = vld [vmem:[%s1676_s2 + $0xa8] sm:$0xff] }
  0x1e   :  { %385 = vmatpush.bf16.msra.mxu0 %v1195_v5  ;;  %856 = vmatpush.bf16.msra.mxu3 %v1226_v51 }
  0x1f   :  { %404 = vmatpush.bf16.msra.mxu1 %v1203_v6 }
  0x20   :  { %423 = vmatpush.bf16.msra.mxu2 %v1211_v12 }
  0x21   :  { %386 = vmatmul.bf16.vlgmr.msra.gmra.mxu0 %v110_v25 }
  0x22   :  { %405 = vmatmul.bf16.vlgmr.msra.gmra.mxu1 %v118_v22  ;;  %875 = vmatpush.bf16.msrb.mxu0 %v1234_v47 }
  0x23   :  { %424 = vmatmul.bf16.vlgmr.msra.gmra.mxu2 %v136_v28  ;;  %894 = vmatpush.bf16.msrb.mxu1 %v1499_v46 }
  0x24   :  { %1303 = vmatpush.bf16.msrb.mxu2 %v1234_v47 }
  0x26   :  { %876 = vmatpush.bf16.msrb.mxu0 %v1233_v49 }
  0x27   :  { %895 = vmatpush.bf16.msrb.mxu1 %v1508_v48 }
  0x28   :  { %1304 = vmatpush.bf16.msrb.mxu2 %v1233_v49 }
  0x2b   :  { %896 = vmatpush.bf16.msrb.mxu1 %v1520_v53 }
  0x31   :  { %391 = vmatmul.bf16.gmra.mxu0 %v156_v55  ;;  %v1232_v55 = vld [vmem:[%s1676_s2 + $0x68] sm:$0xff] }
  0x32   :  { %410 = vmatmul.bf16.gmra.mxu1 %v164_v54  ;;  %877 = vmatpush.bf16.msrb.mxu0 %v1232_v55 }
  0x33   :  { %429 = vmatmul.bf16.gmra.mxu2 %v182_v56  ;;  %v1225_v56 = vld [vmem:[%s1676_s2 + $0x30] sm:$0xff] }
  0x34   :  { %1305 = vmatpush.bf16.msrb.mxu2 %v1232_v55  ;;  %857 = vmatpush.bf16.msra.mxu3 %v1225_v56 }
  0x9e   :  { %v387_v57 = vpop.f32.mrf.mxu0 }
  0x9f   :  { %v406_v58 = vpop.f32.mrf.mxu1 }
  0xa0   :  { %v407_v1 = vadd.f32 %v406_v58, %v387_v57  ;;  %v1536_v58 = vld [vmem:[%s1676_s2 + $0xa0] sm:$0xff] }
  0xa1   :  { %897 = vmatpush.bf16.msrb.mxu1 %v1536_v58 }
  0xa6   :  { %v425_v59 = vpop.f32.mrf.mxu2  ;;  %v389_v60 = vpop.f32.mrf.mxu0 }
  0xa7   :  { %v408_v61 = vpop.f32.mrf.mxu1  ;;  %v1473_v6 = vadd.f32 %v425_v59, %v407_v1  ;;  %v1230_v1 = vld [vmem:[%s1676_s2 + $0x58] sm:$0xff] }
  0xa8   :  { %v409_v2 = vadd.f32 %v408_v61, %v389_v60  ;;  %v1231_v60 = vld [vmem:[%s1676_s2 + $0x60] sm:$0xff]  ;;  %v1224_v61 = vld [vmem:[%s1676_s2 + $0x28] sm:$0xff] }
  0xa9   :  { %v446_v15 = vmul.f32 %v1473_v6, %v1473_v6  ;;  %878 = vmatpush.bf16.msrb.mxu0 %v1231_v60  ;;  %1306 = vmatpush.bf16.msrb.mxu2 %v1231_v60 }
  0xaa   :  { %858 = vmatpush.bf16.msra.mxu3 %v1224_v61 }
  0xad   :  { %879 = vmatpush.bf16.msrb.mxu0 %v1230_v1  ;;  %1307 = vmatpush.bf16.msrb.mxu2 %v1230_v1 }
  0xae   :  { %v427_v62 = vpop.f32.mrf.mxu2  ;;  %v392_v63 = vpop.f32.mrf.mxu0 }
  0xaf   :  { %v411_v0 = vpop.f32.mrf.mxu1  ;;  %v1471_v5 = vadd.f32 %v427_v62, %v409_v2  ;;  %v1223_v2 = vld [vmem:[%s1676_s2 + $0x20] sm:$0xff] }
  0xb0   :  { %v412_v3 = vadd.f32 %v411_v0, %v392_v63  ;;  %v1549_v63 = vld [vmem:[%s1676_s2 + $0x98] sm:$0xff]  ;;  %859 = vmatpush.bf16.msra.mxu3 %v1223_v2 }
  0xb1   :  { %v447_v12 = vmul.f32 %v1471_v5, %v1471_v5  ;;  %v437_v16 = vadd.f32 %v1471_v5, %v1473_v6  ;;  %898 = vmatpush.bf16.msrb.mxu1 %v1549_v63 }
  0xb3   :  { %v450_v21 = vadd.f32 %v447_v12, %v446_v15  ;;  %v1228_v12 = vld [vmem:[%s1676_s2 + $0x48] sm:$0xff]  ;;  %v1221_v15 = vld [vmem:[%s1676_s2 + $0x10] sm:$0xff] }
  0xb6   :  { %v430_v4 = vpop.f32.mrf.mxu2  ;;  %v394_v8 = vpop.f32.mrf.mxu0 }
  0xb7   :  { %v1475_v7 = vadd.f32 %v430_v4, %v412_v3  ;;  %v413_v9 = vpop.f32.mrf.mxu1  ;;  %v1561_v3 = vld [vmem:[%s1676_s2 + $0x90] sm:$0xff] }
  0xb8   :  { %v414_v19 = vadd.f32 %v413_v9, %v394_v8  ;;  %899 = vmatpush.bf16.msrb.mxu1 %v1561_v3  ;;  %v1229_v4 = vld [vmem:[%s1676_s2 + $0x50] sm:$0xff]  ;;  %v1222_v8 = vld [vmem:[%s1676_s2 + $0x18] sm:$0xff]  ;;  %v1573_v9 = vld [vmem:[%s1676_s2 + $0x88] sm:$0xff] }
  0xb9   :  { %v448_v18 = vmul.f32 %v1475_v7, %v1475_v7  ;;  %v438_v22 = vadd.f32 %v437_v16, %v1475_v7  ;;  %880 = vmatpush.bf16.msrb.mxu0 %v1229_v4  ;;  %1308 = vmatpush.bf16.msrb.mxu2 %v1229_v4 }
  0xba   :  { %860 = vmatpush.bf16.msra.mxu3 %v1222_v8 }
  0xbb   :  { %v451_v24 = vadd.f32 %v450_v21, %v448_v18  ;;  %v1585_v18 = vld [vmem:[%s1676_s2 + $0x80] sm:$0xff] }
  0xbc   :  { %900 = vmatpush.bf16.msrb.mxu1 %v1573_v9 }
  0xbd   :  { %881 = vmatpush.bf16.msrb.mxu0 %v1228_v12  ;;  %1309 = vmatpush.bf16.msrb.mxu2 %v1228_v12 }
  0xbe   :  { %v432_v20 = vpop.f32.mrf.mxu2  ;;  %861 = vmatpush.bf16.msra.mxu3 %v1221_v15  ;;  %v1297_v15 = vld [vmem:[#allocation2 + $0x4] sm:$0x8] }
  0xbf   :  { %v1486_v23 = vadd.f32 %v432_v20, %v414_v19  ;;  %v1227_v20 = vld [vmem:[%s1676_s2 + $0x40] sm:$0xff] }
  0xc0   :  { %901 = vmatpush.bf16.msrb.mxu1 %v1585_v18 }
  0xc1   :  { %v439_v25 = vadd.f32 %v438_v22, %v1486_v23  ;;  %v449_v26 = vmul.f32 %v1486_v23, %v1486_v23  ;;  %v1220_v22 = vld [vmem:[%s1676_s2 + $0x8] sm:$0xff]  ;;  %882 = vmatpush.bf16.msrb.mxu0 %v1227_v20  ;;  %1310 = vmatpush.bf16.msrb.mxu2 %v1227_v20 }
  0xc2   :  { %862 = vmatpush.bf16.msra.mxu3 %v1220_v22 }
  0xc3   :  { %v440_v27 = vrot.slane %v439_v25, 4  ;;  %v452_v28 = vadd.f32 %v451_v24, %v449_v26  ;;  %v1219_v26 = vld [vmem:[%s1676_s2] sm:$0xff] }
  0xc5   :  { %v441_v29 = vadd.f32 %v440_v27, %v439_v25  ;;  %v453_v30 = vrot.slane %v452_v28, 4 }
  0xc6   :  { %863 = vmatpush.bf16.msra.mxu3 %v1219_v26 }
  0xc7   :  { %v442_v17 = vrot.slane %v441_v29, 2  ;;  %v454_v31 = vadd.f32 %v453_v30, %v452_v28  ;;  %v435_v28 = vld [vmem:[%s1677_s3] sm:$0x1] }
  0xc9   :  { %v443_v32 = vadd.f32 %v442_v17, %v441_v29  ;;  %v455_v33 = vrot.slane %v454_v31, 2 }
  0xca   :  { %1311 = vmatpush.bf16.msrb.mxu3 %v1499_v46 }
  0xcb   :  { %v444_v34 = vrot.slane %v443_v32, 1  ;;  %v456_v35 = vadd.f32 %v455_v33, %v454_v31  ;;  %v521_v31 = vld [vmem:[#allocation2 + $0x10] sm:$0x1] }
  0xcd   :  { %v457_v36 = vrot.slane %v456_v35, 1  ;;  %v445_v37 = vadd.f32 %v444_v34, %v443_v32  ;;  %v436_v32 = vld [vmem:[%s1677_s3 + $0x1] sm:$0x1] }
  0xce   :  { %1312 = vmatpush.bf16.msrb.mxu3 %v1508_v48 }
  0xcf   :  { %v458_v38 = vadd.f32 %v457_v36, %v456_v35  ;;  %v540_v35 = vunpack.c.l.b16 %v521_v31 }
  0xd1   :  { %v460_v39 = vsel %vm459_vm2, %v445_v37, %v458_v38 }
  0xd2   :  { %461 = vrot.lane.b32.xlu0 %v460_v39, %s1333_s1  ;;  %1313 = vmatpush.bf16.msrb.mxu3 %v1520_v53 }
  0xd6   :  { %1314 = vmatpush.bf16.msrb.mxu3 %v1536_v58 }
  0xda   :  { %1315 = vmatpush.bf16.msrb.mxu3 %v1549_v63 }
  0xde   :  { %1316 = vmatpush.bf16.msrb.mxu3 %v1561_v3 }
  0xe2   :  { %1317 = vmatpush.bf16.msrb.mxu3 %v1573_v9 }
  0xe6   :  { %1318 = vmatpush.bf16.msrb.mxu3 %v1585_v18 }
 0x144   :  { %v462_v40 = vpop.permute.xlu0 %461 }
 0x145   :  { %v463_v41 = vadd.f32 %v462_v40, %v460_v39 }
 0x147   :  { %464 = vrot.lane.b32.xlu0 %v463_v41, %s1334_s18 }
 0x1b9   :  { %v465_v42 = vpop.permute.xlu0 %464 }
 0x1ba   :  { %v466_v43 = vadd.f32 %v465_v42, %v463_v41  ;;  %v541_v42 = vpack.c.b16 %v540_v35, %v540_v35 }
 0x1bc   :  { %467 = vrot.lane.b32.xlu1 %v466_v43, %s1335_s19 }
 0x22e   :  { %v468_v44 = vpop.permute.xlu1 %467 }
 0x22f   :  { %v469_v45 = vadd.f32 %v468_v44, %v466_v43 }
 0x231   :  { %470 = vrot.lane.b32.xlu1 %v469_v45, %s1336_s20 }
 0x2a3   :  { %v471_v50 = vpop.permute.xlu1 %470 }
 0x2a4   :  { %v472_v52 = vadd.f32 %v471_v50, %v469_v45 }
 0x2a6   :  { %v1522_v54 = vmul.f32 0.001953125, %v472_v52 }
 0x2a8   :  { %v474_v57 = vmul.f32 %v1522_v54, %v1522_v54 }
 0x2aa   :  { %v476_v59 = vrot.slane %v474_v57, 7 }
 0x2ac   :  { %v478_v62 = vsub.f32 %v1522_v54, %v476_v59 }
 0x2ae   :  { %v479_v0 = vadd.f32 1e-05, %v478_v62 }
 0x2b0   :  { %1328 = vrsqrt.f32 %v479_v0  ;;  %vm486_vm4 = vweird.f32 %v479_v0 }
 0x2b6   :  { %v1329_v16 = vpop.eup %1328 }
 0x2b7   :  { %v481_v19 = vmul.f32 %v1329_v16, %v479_v0  ;;  %vm487_vm3 = vweird.f32 %v1329_v16 }
 0x2b8   :  { %vm488_vm5 = vmor %vm486_vm4, %vm487_vm3 }
 0x2b9   :  { %v482_v21 = vmul.f32 %v1329_v16, %v481_v19 }
 0x2bb   :  { %v483_v24 = vmul.f32 0.5, %v482_v21 }
 0x2bd   :  { %v484_v25 = vsub.f32 1.5, %v483_v24 }
 0x2bf   :  { %v485_v27 = vmul.f32 %v1329_v16, %v484_v25 }
 0x2c1   :  { %v489_v29 = vsel %vm488_vm5, %v1329_v16, %v485_v27 }
 0x2c2   :  { %v491_v30 = vrot.slane %v489_v29, 1 }
 0x2c4   :  { %v493_v17 = vmul.f32 %v491_v30, %v435_v28 }
 0x2c6   :  { %v494_v33 = vmul.f32 %v493_v17, %v1522_v54  ;;  %v496_v34 = vperm.slane %v493_v17, 0 }
 0x2c8   :  { %v495_v36 = vsub.f32 %v436_v32, %v494_v33  ;;  %v497_v37 = vmul.f32 %v496_v34, %v1473_v6  ;;  %v498_v38 = vmul.f32 %v496_v34, %v1471_v5  ;;  %v499_v39 = vmul.f32 %v496_v34, %v1475_v7 }
 0x2c9   :  { %v500_v40 = vmul.f32 %v496_v34, %v1486_v23  ;;  %v543_v7 = vrot.slane %v541_v42, 5 }
 0x2ca   :  { %v501_v41 = vperm.slane %v495_v36, 0 }
 0x2cc   :  { %v502_v43 = vadd.f32 %v501_v41, %v497_v37  ;;  %v503_v44 = vadd.f32 %v501_v41, %v498_v38  ;;  %v504_v45 = vadd.f32 %v501_v41, %v499_v39  ;;  %v505_v46 = vadd.f32 %v501_v41, %v500_v40  ;;  %v1301_v41 = vld [vmem:[#allocation2 + $0x1c] sm:$0x8] }
 0x2ce   :  { %v506_v47 = vmax.f32 %v502_v43, 0.0  ;;  %v507_v48 = vmax.f32 %v503_v44, 0.0  ;;  %v508_v49 = vmax.f32 %v504_v45, 0.0  ;;  %v509_v50 = vmax.f32 %v505_v46, 0.0 }
 0x2d0   :  { %v1264_v6 = vpack.c.bf16 %v507_v48, %v506_v47  ;;  %v1612_v5 = vpack.c.bf16 %v509_v50, %v508_v49  ;;  %v548_v49 = vld [vmem:[#allocation2 + $0x28] sm:$0x1] }
 0x2d2   :  { %1283 = vst [vmem:[#allocation2 + $0x8] sm:$0xff] %v1264_v6   ;;  %v542_v23 = vrot.slane %v1264_v6, 5  ;;  %v1274_v51 = vunpack.c.h.b16 %v1264_v6  ;;  %v532_v52 = vshrl.u32 %v1264_v6, 16  ;;  %v535_v53 = vshll.u32 %v1264_v6, 16 }
 0x2d3   :  { %1284 = vst [vmem:[#allocation2 + $0x20] sm:$0xff] %v1612_v5   ;;  %v559_v54 = vshrl.u32 %v1612_v5, 16  ;;  %v562_v55 = vshll.u32 %v1612_v5, 16  ;;  %v1278_v45 = vunpack.c.h.b16 %v1612_v5 }
 0x2d4   :  { %v544_v56 = vsel %vm62_vm0, %v542_v23, %v543_v7  ;;  %v599_v57 = vshrl.u32 %v542_v23, 16  ;;  %v602_v58 = vshll.u32 %v542_v23, 16  ;;  %v529_v59 = vpack.c.b16 %v1274_v51, %v1274_v51 }
 0x2d5   :  { %v607_v60 = vshrl.u32 %v544_v56, 16  ;;  %v610_v61 = vshll.u32 %v544_v56, 16  ;;  %v534_v62 = vrot.slane %v532_v52, 4  ;;  %v537_v0 = vrot.slane %v535_v53, 5 }
 0x2d6   :  { %v601_v1 = vrot.slane %v599_v57, 3  ;;  %v604_v2 = vrot.slane %v602_v58, 4  ;;  %v581_v4 = vshrl.u32 %v529_v59, 16  ;;  %v584_v8 = vshll.u32 %v529_v59, 16 }
 0x2d7   :  { %v609_v63 = vrot.slane %v607_v60, 3  ;;  %v612_v12 = vrot.slane %v610_v61, 4  ;;  %v538_v16 = vor.u32 %v537_v0, %v534_v62  ;;  %v561_v19 = vrot.slane %v559_v54, 4 }
 0x2d8   :  { %v605_v20 = vor.u32 %v604_v2, %v601_v1  ;;  %v564_v21 = vrot.slane %v562_v55, 5  ;;  %v583_v28 = vrot.slane %v581_v4, 3  ;;  %v586_v17 = vrot.slane %v584_v8, 4 }
 0x2d9   :  { %v613_v22 = vor.u32 %v612_v12, %v609_v63  ;;  %v1321_v24 = vld [vmem:[#allocation2 + $0x4] sm:$0xf0]   ;;  %v590_v25 = vshrl.u32 %v538_v16, 16  ;;  %v593_v26 = vshll.u32 %v538_v16, 16  ;;  %v556_v48 = vpack.c.b16 %v1278_v45, %v1278_v45 }
 0x2da   :  { %v1298_v27 = vor.u32 %v1321_v24, %v1297_v15  ;;  %v565_v29 = vor.u32 %v564_v21, %v561_v19  ;;  %v1322_v9 = vld [vmem:[#allocation2 + $0x1c] sm:$0xf0]   ;;  %v587_v43 = vor.u32 %v586_v17, %v583_v28  ;;  %v567_v7 = vunpack.c.l.b16 %v548_v49 }
 0x2db   :  { %v614_v30 = vsel %vm93_vm1, %v605_v20, %v613_v22  ;;  %v592_v3 = vrot.slane %v590_v25, 3  ;;  %v595_v31 = vrot.slane %v593_v26, 4  ;;  %v1302_v47 = vor.u32 %v1322_v9, %v1301_v41 }
 0x2dc   :  { %902 = vmatmul.bf16.vlgmr.msrb.gmra.mxu1 %v614_v30  ;;  %v573_v32 = vshrl.u32 %v1298_v27, 16  ;;  %v576_v33 = vshll.u32 %v1298_v27, 16  ;;  %v636_v34 = vshrl.u32 %v565_v29, 16  ;;  %v639_v35 = vshll.u32 %v565_v29, 16 }
 0x2dd   :  { %v596_v36 = vor.u32 %v595_v31, %v592_v3  ;;  %v619_v50 = vshrl.u32 %v1302_v47, 16  ;;  %v622_v6 = vshll.u32 %v1302_v47, 16  ;;  %v627_v23 = vshrl.u32 %v556_v48, 16 }
 0x2de   :  { %v575_v37 = vrot.slane %v573_v32, 3  ;;  %v578_v38 = vrot.slane %v576_v33, 4  ;;  %v638_v39 = vrot.slane %v636_v34, 3  ;;  %v641_v40 = vrot.slane %v639_v35, 4 }
 0x2df   :  { %883 = vmatmul.bf16.vlgmr.msrb.gmra.mxu0 %v596_v36  ;;  %v630_v18 = vshll.u32 %v556_v48, 16  ;;  %v621_v51 = vrot.slane %v619_v50, 3  ;;  %v624_v52 = vrot.slane %v622_v6, 4  ;;  %v568_v53 = vpack.c.b16 %v567_v7, %v567_v7 }
 0x2e0   :  { %v579_v42 = vor.u32 %v578_v38, %v575_v37  ;;  %v642_v44 = vor.u32 %v641_v40, %v638_v39  ;;  %v629_v54 = vrot.slane %v627_v23, 3  ;;  %v569_v57 = vrot.slane %v1612_v5, 5 }
 0x2e1   :  { %v632_v55 = vrot.slane %v630_v18, 4  ;;  %v625_v56 = vor.u32 %v624_v52, %v621_v51  ;;  %v570_v58 = vrot.slane %v568_v53, 5 }
 0x2e2   :  { %v588_v46 = vsel %vm93_vm1, %v579_v42, %v587_v43  ;;  %888 = vmatmul.bf16.vlgmr.msrb.gmra.mxu2 %v642_v44  ;;  %v645_v62 = vshrl.u32 %v569_v57, 16  ;;  %v648_v0 = vshll.u32 %v569_v57, 16 }
 0x2e3   :  { %864 = vmatmul.bf16.vlgmr.msra.gmra.mxu3 %v588_v46  ;;  %v633_v59 = vor.u32 %v632_v55, %v629_v54  ;;  %v571_v61 = vsel %vm62_vm0, %v569_v57, %v570_v58 }
 0x2e4   :  { %v653_v1 = vshrl.u32 %v571_v61, 16  ;;  %v656_v2 = vshll.u32 %v571_v61, 16  ;;  %v647_v4 = vrot.slane %v645_v62, 3  ;;  %v650_v8 = vrot.slane %v648_v0, 4 }
 0x2e5   :  { %v634_v60 = vsel %vm93_vm1, %v625_v56, %v633_v59 }
 0x2e6   :  { %v655_v63 = vrot.slane %v653_v1, 3  ;;  %v658_v12 = vrot.slane %v656_v2, 4  ;;  %v651_v15 = vor.u32 %v650_v8, %v647_v4 }
 0x2e8   :  { %v659_v16 = vor.u32 %v658_v12, %v655_v63 }
 0x2ea   :  { %v660_v19 = vsel %vm93_vm1, %v651_v15, %v659_v16 }
 0x2f3   :  { %869 = vmatmul.bf16.gmra.mxu3 %v634_v60 }
 0x303   :  { %907 = vmatmul.bf16.vlgmr.msrb.gmra.mxu3 %v660_v19 }
 0x359   :  { %v903_v24 = vpop.f32.mrf.mxu1 }
 0x35c   :  { %v884_v22 = vpop.f32.mrf.mxu0 }
 0x361   :  { %v905_v30 = vpop.f32.mrf.mxu1 }
 0x364   :  { %v886_v27 = vpop.f32.mrf.mxu0 }
 0x365   :  { %v889_v26 = vpop.f32.mrf.mxu2 }
 0x366   :  { %v865_v5 = vpop.f32.mrf.mxu3 }
 0x367   :  { %v885_v29 = vadd.f32 %v884_v22, %v865_v5 }
 0x369   :  { %v1631_v32 = vadd.f32 %v903_v24, %v885_v29 }
 0x36b   :  { %v924_v36 = vmul.f32 %v1631_v32, %v1631_v32 }
 0x36d   :  { %v891_v35 = vpop.f32.mrf.mxu2 }
 0x36e   :  { %v867_v20 = vpop.f32.mrf.mxu3 }
 0x36f   :  { %v887_v28 = vadd.f32 %v886_v27, %v867_v20 }
 0x371   :  { %v1629_v3 = vadd.f32 %v905_v30, %v887_v28 }
 0x373   :  { %v925_v34 = vmul.f32 %v1629_v3, %v1629_v3  ;;  %v915_v38 = vadd.f32 %v1629_v3, %v1631_v32 }
 0x375   :  { %v928_v9 = vadd.f32 %v925_v34, %v924_v36 }
 0x376   :  { %v870_v21 = vpop.f32.mrf.mxu3 }
 0x377   :  { %v890_v31 = vadd.f32 %v889_v26, %v870_v21  ;;  %v913_v21 = vld [vmem:[%s1677_s3 + $0x2] sm:$0x1]  ;;  %v914_v26 = vld [vmem:[%s1677_s3 + $0x3] sm:$0x1] }
 0x37e   :  { %v872_v25 = vpop.f32.mrf.mxu3 }
 0x37f   :  { %v892_v37 = vadd.f32 %v891_v35, %v872_v25 }
 0x386   :  { %v908_v17 = vpop.f32.mrf.mxu3 }
 0x387   :  { %v1633_v33 = vadd.f32 %v908_v17, %v890_v31 }
 0x389   :  { %v926_v39 = vmul.f32 %v1633_v33, %v1633_v33  ;;  %v916_v41 = vadd.f32 %v915_v38, %v1633_v33 }
 0x38b   :  { %v929_v43 = vadd.f32 %v928_v9, %v926_v39 }
 0x38e   :  { %v910_v40 = vpop.f32.mrf.mxu3 }
 0x38f   :  { %v911_v42 = vadd.f32 %v910_v40, %v892_v37 }
 0x391   :  { %v917_v44 = vadd.f32 %v916_v41, %v911_v42  ;;  %v927_v45 = vmul.f32 %v911_v42, %v911_v42 }
 0x393   :  { %v918_v46 = vrot.slane %v917_v44, 4  ;;  %v930_v47 = vadd.f32 %v929_v43, %v927_v45 }
 0x395   :  { %v919_v48 = vadd.f32 %v918_v46, %v917_v44  ;;  %v931_v49 = vrot.slane %v930_v47, 4 }
 0x397   :  { %v920_v50 = vrot.slane %v919_v48, 2  ;;  %v932_v6 = vadd.f32 %v931_v49, %v930_v47 }
 0x399   :  { %v921_v7 = vadd.f32 %v920_v50, %v919_v48  ;;  %v933_v23 = vrot.slane %v932_v6, 2 }
 0x39b   :  { %v922_v18 = vrot.slane %v921_v7, 1  ;;  %v934_v51 = vadd.f32 %v933_v23, %v932_v6 }
 0x39d   :  { %v935_v52 = vrot.slane %v934_v51, 1  ;;  %v923_v53 = vadd.f32 %v922_v18, %v921_v7 }
 0x39f   :  { %v936_v54 = vadd.f32 %v935_v52, %v934_v51 }
 0x3a1   :  { %v937_v55 = vsel %vm459_vm2, %v923_v53, %v936_v54 }
 0x3a2   :  { %938 = vrot.lane.b32.xlu2 %v937_v55, %s1333_s1 }
 0x3fc   :  { %v939_v56 = vpop.permute.xlu2 %938 }
 0x3fd   :  { %v940_v57 = vadd.f32 %v939_v56, %v937_v55 }
 0x3ff   :  { %941 = vrot.lane.b32.xlu2 %v940_v57, %s1334_s18 }
 0x459   :  { %v942_v58 = vpop.permute.xlu2 %941 }
 0x45a   :  { %v943_v59 = vadd.f32 %v942_v58, %v940_v57 }
 0x45c   :  { %944 = vrot.lane.b32.xlu0 %v943_v59, %s1335_s19 }
 0x4ce   :  { %v945_v60 = vpop.permute.xlu0 %944 }
 0x4cf   :  { %v946_v61 = vadd.f32 %v945_v60, %v943_v59 }
 0x4d1   :  { %947 = vrot.lane.b32.xlu1 %v946_v61, %s1336_s20 }
 0x543   :  { %v948_v62 = vpop.permute.xlu1 %947 }
 0x544   :  { %v949_v0 = vadd.f32 %v948_v62, %v946_v61 }
 0x546   :  { %v950_v1 = vmul.f32 0.001953125, %v949_v0 }
 0x548   :  { %v951_v2 = vmul.f32 %v950_v1, %v950_v1 }
 0x54a   :  { %v953_v4 = vrot.slane %v951_v2, 7 }
 0x54c   :  { %v955_v8 = vsub.f32 %v950_v1, %v953_v4 }
 0x54e   :  { %v956_v63 = vadd.f32 1e-05, %v955_v8 }
 0x550   :  { %1330 = vrsqrt.f32 %v956_v63  ;;  %vm963_vm7 = vweird.f32 %v956_v63 }
 0x556   :  { %v1331_v12 = vpop.eup %1330 }
 0x557   :  { %v958_v15 = vmul.f32 %v1331_v12, %v956_v63  ;;  %vm964_vm6 = vweird.f32 %v1331_v12 }
 0x558   :  { %vm965_vm8 = vmor %vm963_vm7, %vm964_vm6 }
 0x559   :  { %v959_v16 = vmul.f32 %v1331_v12, %v958_v15 }
 0x55b   :  { %v960_v19 = vmul.f32 0.5, %v959_v16 }
 0x55d   :  { %v961_v5 = vsub.f32 1.5, %v960_v19 }
 0x55f   :  { %v962_v20 = vmul.f32 %v1331_v12, %v961_v5 }
 0x561   :  { %v966_v22 = vsel %vm965_vm8, %v1331_v12, %v962_v20 }
 0x562   :  { %v968_v24 = vrot.slane %v966_v22, 1 }
 0x564   :  { %v970_v25 = vmul.f32 %v968_v24, %v913_v21 }
 0x566   :  { %v971_v27 = vmul.f32 %v970_v25, %v950_v1  ;;  %v973_v28 = vperm.slane %v970_v25, 0 }
 0x568   :  { %v972_v29 = vsub.f32 %v914_v26, %v971_v27  ;;  %v974_v30 = vmul.f32 %v973_v28, %v1631_v32  ;;  %v975_v17 = vmul.f32 %v973_v28, %v1629_v3  ;;  %v976_v31 = vmul.f32 %v973_v28, %v1633_v33 }
 0x569   :  { %v977_v34 = vmul.f32 %v973_v28, %v911_v42 }
 0x56a   :  { %v978_v35 = vperm.slane %v972_v29, 0 }
 0x56c   :  { %v979_v36 = vadd.f32 %v978_v35, %v974_v30  ;;  %v980_v37 = vadd.f32 %v978_v35, %v975_v17  ;;  %v981_v38 = vadd.f32 %v978_v35, %v976_v31  ;;  %v982_v39 = vadd.f32 %v978_v35, %v977_v34 }
 0x56e   :  { %v987_v40 = vadd.f32 %v979_v36, %v1392_v10  ;;  %v988_v41 = vadd.f32 %v980_v37, %v1397_v11  ;;  %v989_v9 = vadd.f32 %v981_v38, %v1404_v13  ;;  %v990_v43 = vadd.f32 %v982_v39, %v1409_v14 }
 0x570   :  { %v991_v44 = vmax.f32 %v987_v40, 0.0  ;;  %v992_v32 = vmax.f32 %v988_v41, 0.0  ;;  %v993_v45 = vmax.f32 %v989_v9, 0.0  ;;  %v994_v3 = vmax.f32 %v990_v43, 0.0 }
 0x572   :  { %995 = vst [vmem:[%s1678_s4] sm:$0xff] %v991_v44 }
 0x573   :  { %996 = vst [vmem:[%s1678_s4 + $0x8] sm:$0xff] %v992_v32 }
 0x574   :  { %997 = vst [vmem:[%s1678_s4 + $0x10] sm:$0xff] %v993_v45 }
 0x575   :  { %998 = vst [vmem:[%s1678_s4 + $0x18] sm:$0xff] %v994_v3 }

</bundles_post_ra>
